<compile_context>
chip_gen: v7x
topology: tpu7x:2x2x1
jax: 0.10.0
libtpu: 0.0.40
codegen_flags: <defaults>
</compile_context>

<pallas_src>
import functools

import jax
import jax.numpy as jnp
from jax import lax
from jax.experimental import pallas as pl
from jax.experimental.pallas import tpu as pltpu

DILATIONS = (4, 6, 12, 18)
KSIZE = 3
PAD = max(DILATIONS)                                         # one shared zero-pad = 18
# Tap t = di*3 + k reads padded column l + PAD + (k-1)*d  ->  in-tile offsets 0..36.
TAP_OFFSETS = tuple(PAD + (k - 1) * d for d in DILATIONS for k in range(KSIZE))
NTAPS = len(TAP_OFFSETS)                                     # 12
HALO = 128                                                   # lane-aligned right halo (>= 36)


def aspp_kernel(xm_ref, xh_ref, w_ref, b_ref, o_ref, *, tl):
    """One (batch, L-tile) grid step.

    xm_ref : (1, C, tl)          main padded-input window (channels-first, lanes = L)
    xh_ref : (1, C, HALO)        right halo so dilated taps up to +36 stay in-tile
    w_ref  : (NTAPS, depth, C)   folded (atrous @ 1x1) weights
    b_ref  : (depth, 1)          folded bias
    o_ref  : (1, depth, tl)      lane-dense output tile
    """
    xw = jnp.concatenate([xm_ref[0], xh_ref[0]], axis=-1)    # (C, tl + HALO)
    acc = jnp.zeros(o_ref.shape[1:], jnp.float32)            # (depth, tl), f32 accumulator
    for t, off in enumerate(TAP_OFFSETS):                    # 12 accumulating MXU dots
        acc = acc + jnp.dot(w_ref[t], xw[:, off:off + tl],
                            preferred_element_type=jnp.float32)
    o_ref[0] = (acc + b_ref[...]).astype(o_ref.dtype)


def aspp_forward(x, w_comb, b_comb, *, tl=512, compute_dtype=jnp.float32):
    """x: (N, C_in, L) float32 (PyTorch NCL). Returns (N, depth, L) float32."""
    N, C, L = x.shape
    _, depth, _ = w_comb.shape
    assert tl >= 128 and tl % 128 == 0, "tl must be a positive multiple of 128"

    num_tiles = pl.cdiv(L, tl)
    Lp = num_tiles * tl + HALO                               # padded length along L
    # Single shared zero pad (left = PAD, right fills to Lp). Layout stays channels-first.
    # TODO(synk): the pad is still one host-side HBM pass over x; an in-kernel masked halo
    # would remove it, at the cost of first/last-tile masking logic.
    xp = jnp.pad(x, ((0, 0), (0, 0), (PAD, Lp - L - PAD))).astype(compute_dtype)
    w_c = w_comb.astype(compute_dtype)
    b_c = b_comb.astype(jnp.float32)

    # VMEM budget: double-buffered main+halo input, output tile, resident weights.
    est = 2 * (C * (tl + HALO) * xp.dtype.itemsize
               + depth * tl * 4
               + NTAPS * depth * C * w_c.dtype.itemsize
               + depth * 4)
    vmem_limit = int(min(max(4 * est, 32 * 1024 * 1024), 48 * 1024 * 1024))

    kern = functools.partial(aspp_kernel, tl=tl)
    out = pl.pallas_call(
        kern,
        out_shape=jax.ShapeDtypeStruct((N, depth, num_tiles * tl), jnp.float32),
        grid_spec=pltpu.PrefetchScalarGridSpec(
            num_scalar_prefetch=0,
            grid=(N, num_tiles),
            in_specs=[
                # main window: blocked tile i along (padded) L
                pl.BlockSpec((1, C, tl), lambda n, i: (n, 0, i)),
                # right halo: the 128-wide block starting at element (i+1)*tl
                pl.BlockSpec((1, C, HALO), lambda n, i: (n, 0, (i + 1) * (tl // HALO))),
                # folded weights / bias: resident, same block every step
                pl.BlockSpec((NTAPS, depth, C), lambda n, i: (0, 0, 0)),
                pl.BlockSpec((depth, 1), lambda n, i: (0, 0)),
            ],
            out_specs=pl.BlockSpec((1, depth, tl), lambda n, i: (n, 0, i)),
        ),
        compiler_params=pltpu.CompilerParams(
            dimension_semantics=("parallel", "parallel"),
            vmem_limit_bytes=vmem_limit,
        ),
    )(xp, xp, w_c, b_c)

    return out[:, :, :L]                                     # drop the L-tile round-up


def init_params(key, in_channel, depth):
    """PyTorch Conv1d default init (uniform +-1/sqrt(fan_in)) for every conv used in forward()."""
    keys = jax.random.split(key, 10)
    pt = {}
    bound3 = 1.0 / (in_channel * KSIZE) ** 0.5
    for i, d in enumerate(DILATIONS):
        pt[f"w{d}"] = jax.random.uniform(keys[2 * i], (depth, in_channel, KSIZE),
                                         jnp.float32, -bound3, bound3)
        pt[f"b{d}"] = jax.random.uniform(keys[2 * i + 1], (depth,),
                                         jnp.float32, -bound3, bound3)
    bound1 = 1.0 / (4 * depth) ** 0.5
    pt["w1x1"] = jax.random.uniform(keys[8], (depth, 4 * depth, 1),
                                    jnp.float32, -bound1, bound1)
    pt["b1x1"] = jax.random.uniform(keys[9], (depth,), jnp.float32, -bound1, bound1)
    return pt


def fold_params(pt, depth):
    """Fold the 1x1 output conv into the dilated taps (exact: purely linear network)."""
    W1 = pt["w1x1"][:, :, 0]                                 # (depth, 4*depth)
    taps = []
    b_comb = pt["b1x1"]
    for di, d in enumerate(DILATIONS):
        W1d = W1[:, di * depth:(di + 1) * depth]             # (depth, depth)
        wd = pt[f"w{d}"]                                     # (depth, C, K)
        for k in range(KSIZE):
            taps.append(W1d @ wd[:, :, k])                   # (depth, C)
        b_comb = b_comb + W1d @ pt[f"b{d}"]
    w_comb = jnp.stack(taps, axis=0)                         # (NTAPS, depth, C)
    return w_comb, b_comb[:, None]                           # bias as (depth, 1)


def ref_forward(x, pt):
    """Pure-JAX reference matching the PyTorch forward exactly (NCL conv1d)."""
    dn = ("NCH", "OIH", "NCH")
    outs = []
    for d in DILATIONS:
        y = lax.conv_general_dilated(x, pt[f"w{d}"], window_strides=(1,),
                                     padding=[(d, d)], rhs_dilation=(d,),
                                     dimension_numbers=dn)
        outs.append(y + pt[f"b{d}"][None, :, None])
    cat = jnp.concatenate(outs, axis=1)
    y = lax.conv_general_dilated(cat, pt["w1x1"], window_strides=(1,),
                                 padding=[(0, 0)], dimension_numbers=dn)
    return y + pt["b1x1"][None, :, None]


if __name__ == "__main__":
    key = jax.random.PRNGKey(0)
    configs = [
        # (N, C_in, L, depth, tl, compute_dtype, max-abs tolerance)
        (2, 16, 256, 4, 128, jnp.float32, 1e-4),   # exact f32 path, 2 L-tiles
        (2, 16, 256, 4, 128, jnp.bfloat16, 5e-2),  # bf16 MXU inputs, f32 accumulation
        (2, 8, 200, 1, 128, jnp.float32, 1e-4),    # module-default depth=1, L not a tile multiple
    ]
    for cfg_i, (N, C_in, L, depth, tl, cdt, tol) in enumerate(configs):
        kx, kp = jax.random.split(jax.random.fold_in(key, cfg_i))
        x = jax.random.normal(kx, (N, C_in, L), jnp.float32)
        pt = init_params(kp, C_in, depth)
        w_comb, b_comb = fold_params(pt, depth)

        out = jax.block_until_ready(
            aspp_forward(x, w_comb, b_comb, tl=tl, compute_dtype=cdt))
        ref = jax.block_until_ready(ref_forward(x, pt))

        assert out.shape == (N, depth, L), (out.shape, (N, depth, L))
        err = float(jnp.max(jnp.abs(out - ref)))
        assert err <= tol, (cfg_i, err, tol)

    print("KERNEL_OK")
</pallas_src>

<mosaic_0001>
module attributes {stable_mosaic.version = 11 : i64} {
  func.func @aspp_kernel(%arg0: i32, %arg1: i32, %arg2: memref<1x16x128xf32, #tpu.memory_space<vmem>>, %arg3: memref<1x16x128xf32, #tpu.memory_space<vmem>>, %arg4: memref<12x4x16xf32, #tpu.memory_space<vmem>>, %arg5: memref<4x1xf32, #tpu.memory_space<vmem>>, %arg6: memref<1x4x128xf32, #tpu.memory_space<vmem>>) attributes {dimension_semantics = [#tpu.dimension_semantics<parallel>, #tpu.dimension_semantics<parallel>], iteration_bounds = array<i64: 2, 2>, scalar_prefetch = 0 : i64, scratch_operands = 0 : i64, tpu.core_type = #tpu.core_type<tc>, window_params = [{transform_indices = @transform_0, window_bounds = array<i64: 1, 16, 128>}, {transform_indices = @transform_1, window_bounds = array<i64: 1, 16, 128>}, {pipeline_mode = #tpu.pipeline_mode<synchronous>, transform_indices = @transform_2, window_bounds = array<i64: 12, 4, 16>}, {pipeline_mode = #tpu.pipeline_mode<synchronous>, transform_indices = @transform_3, window_bounds = array<i64: 4, 1>}, {transform_indices = @transform_4, window_bounds = array<i64: 1, 4, 128>}]} {
    %c0 = arith.constant 0 : index
    %c0_0 = arith.constant 0 : index
    %c0_1 = arith.constant 0 : index
    %0 = vector.load %arg2[%c0, %c0_0, %c0_1] : memref<1x16x128xf32, #tpu.memory_space<vmem>>, vector<1x16x128xf32>
    %1 = vector.shape_cast %0 : vector<1x16x128xf32> to vector<16x128xf32>
    %c0_2 = arith.constant 0 : index
    %c0_3 = arith.constant 0 : index
    %c0_4 = arith.constant 0 : index
    %2 = vector.load %arg3[%c0_2, %c0_3, %c0_4] : memref<1x16x128xf32, #tpu.memory_space<vmem>>, vector<1x16x128xf32>
    %3 = vector.shape_cast %2 : vector<1x16x128xf32> to vector<16x128xf32>
    %4 = tpu.concatenate %1, %3 in 1 : vector<16x128xf32>, vector<16x128xf32> -> vector<16x256xf32>
    %cst = arith.constant 0.000000e+00 : f32
    %5 = vector.broadcast %cst : f32 to vector<4x128xf32>
    %c0_5 = arith.constant 0 : index
    %c0_6 = arith.constant 0 : index
    %c0_7 = arith.constant 0 : index
    %6 = vector.load %arg4[%c0_5, %c0_6, %c0_7] : memref<12x4x16xf32, #tpu.memory_space<vmem>>, vector<1x4x16xf32>
    %7 = vector.shape_cast %6 : vector<1x4x16xf32> to vector<4x16xf32>
    %8 = vector.extract_strided_slice %4 {offsets = [0, 14], sizes = [16, 128], strides = [1, 1]} : vector<16x256xf32> to vector<16x128xf32>
    %cst_8 = arith.constant dense<0.000000e+00> : vector<4x128xf32>
    %9 = tpu.matmul %7, %8, %cst_8 {dimension_numbers = #tpu.dot_dimension_numbers<[1], [0], [0], [1], [0, 0, 1, 1], [], []>} : vector<4x16xf32>, vector<16x128xf32>, vector<4x128xf32> -> vector<4x128xf32>
    %10 = arith.addf %5, %9 : vector<4x128xf32>
    %c1 = arith.constant 1 : index
    %c0_9 = arith.constant 0 : index
    %c0_10 = arith.constant 0 : index
    %11 = vector.load %arg4[%c1, %c0_9, %c0_10] : memref<12x4x16xf32, #tpu.memory_space<vmem>>, vector<1x4x16xf32>
    %12 = vector.shape_cast %11 : vector<1x4x16xf32> to vector<4x16xf32>
    %13 = vector.extract_strided_slice %4 {offsets = [0, 18], sizes = [16, 128], strides = [1, 1]} : vector<16x256xf32> to vector<16x128xf32>
    %cst_11 = arith.constant dense<0.000000e+00> : vector<4x128xf32>
    %14 = tpu.matmul %12, %13, %cst_11 {dimension_numbers = #tpu.dot_dimension_numbers<[1], [0], [0], [1], [0, 0, 1, 1], [], []>} : vector<4x16xf32>, vector<16x128xf32>, vector<4x128xf32> -> vector<4x128xf32>
    %15 = arith.addf %10, %14 : vector<4x128xf32>
    %c2 = arith.constant 2 : index
    %c0_12 = arith.constant 0 : index
    %c0_13 = arith.constant 0 : index
    %16 = vector.load %arg4[%c2, %c0_12, %c0_13] : memref<12x4x16xf32, #tpu.memory_space<vmem>>, vector<1x4x16xf32>
    %17 = vector.shape_cast %16 : vector<1x4x16xf32> to vector<4x16xf32>
    %18 = vector.extract_strided_slice %4 {offsets = [0, 22], sizes = [16, 128], strides = [1, 1]} : vector<16x256xf32> to vector<16x128xf32>
    %cst_14 = arith.constant dense<0.000000e+00> : vector<4x128xf32>
    %19 = tpu.matmul %17, %18, %cst_14 {dimension_numbers = #tpu.dot_dimension_numbers<[1], [0], [0], [1], [0, 0, 1, 1], [], []>} : vector<4x16xf32>, vector<16x128xf32>, vector<4x128xf32> -> vector<4x128xf32>
    %20 = arith.addf %15, %19 : vector<4x128xf32>
    %c3 = arith.constant 3 : index
    %c0_15 = arith.constant 0 : index
    %c0_16 = arith.constant 0 : index
    %21 = vector.load %arg4[%c3, %c0_15, %c0_16] : memref<12x4x16xf32, #tpu.memory_space<vmem>>, vector<1x4x16xf32>
    %22 = vector.shape_cast %21 : vector<1x4x16xf32> to vector<4x16xf32>
    %23 = vector.extract_strided_slice %4 {offsets = [0, 12], sizes = [16, 128], strides = [1, 1]} : vector<16x256xf32> to vector<16x128xf32>
    %cst_17 = arith.constant dense<0.000000e+00> : vector<4x128xf32>
    %24 = tpu.matmul %22, %23, %cst_17 {dimension_numbers = #tpu.dot_dimension_numbers<[1], [0], [0], [1], [0, 0, 1, 1], [], []>} : vector<4x16xf32>, vector<16x128xf32>, vector<4x128xf32> -> vector<4x128xf32>
    %25 = arith.addf %20, %24 : vector<4x128xf32>
    %c4 = arith.constant 4 : index
    %c0_18 = arith.constant 0 : index
    %c0_19 = arith.constant 0 : index
    %26 = vector.load %arg4[%c4, %c0_18, %c0_19] : memref<12x4x16xf32, #tpu.memory_space<vmem>>, vector<1x4x16xf32>
    %27 = vector.shape_cast %26 : vector<1x4x16xf32> to vector<4x16xf32>
    %28 = vector.extract_strided_slice %4 {offsets = [0, 18], sizes = [16, 128], strides = [1, 1]} : vector<16x256xf32> to vector<16x128xf32>
    %cst_20 = arith.constant dense<0.000000e+00> : vector<4x128xf32>
    %29 = tpu.matmul %27, %28, %cst_20 {dimension_numbers = #tpu.dot_dimension_numbers<[1], [0], [0], [1], [0, 0, 1, 1], [], []>} : vector<4x16xf32>, vector<16x128xf32>, vector<4x128xf32> -> vector<4x128xf32>
    %30 = arith.addf %25, %29 : vector<4x128xf32>
    %c5 = arith.constant 5 : index
    %c0_21 = arith.constant 0 : index
    %c0_22 = arith.constant 0 : index
    %31 = vector.load %arg4[%c5, %c0_21, %c0_22] : memref<12x4x16xf32, #tpu.memory_space<vmem>>, vector<1x4x16xf32>
    %32 = vector.shape_cast %31 : vector<1x4x16xf32> to vector<4x16xf32>
    %33 = vector.extract_strided_slice %4 {offsets = [0, 24], sizes = [16, 128], strides = [1, 1]} : vector<16x256xf32> to vector<16x128xf32>
    %cst_23 = arith.constant dense<0.000000e+00> : vector<4x128xf32>
    %34 = tpu.matmul %32, %33, %cst_23 {dimension_numbers = #tpu.dot_dimension_numbers<[1], [0], [0], [1], [0, 0, 1, 1], [], []>} : vector<4x16xf32>, vector<16x128xf32>, vector<4x128xf32> -> vector<4x128xf32>
    %35 = arith.addf %30, %34 : vector<4x128xf32>
    %c6 = arith.constant 6 : index
    %c0_24 = arith.constant 0 : index
    %c0_25 = arith.constant 0 : index
    %36 = vector.load %arg4[%c6, %c0_24, %c0_25] : memref<12x4x16xf32, #tpu.memory_space<vmem>>, vector<1x4x16xf32>
    %37 = vector.shape_cast %36 : vector<1x4x16xf32> to vector<4x16xf32>
    %38 = vector.extract_strided_slice %4 {offsets = [0, 6], sizes = [16, 128], strides = [1, 1]} : vector<16x256xf32> to vector<16x128xf32>
    %cst_26 = arith.constant dense<0.000000e+00> : vector<4x128xf32>
    %39 = tpu.matmul %37, %38, %cst_26 {dimension_numbers = #tpu.dot_dimension_numbers<[1], [0], [0], [1], [0, 0, 1, 1], [], []>} : vector<4x16xf32>, vector<16x128xf32>, vector<4x128xf32> -> vector<4x128xf32>
    %40 = arith.addf %35, %39 : vector<4x128xf32>
    %c7 = arith.constant 7 : index
    %c0_27 = arith.constant 0 : index
    %c0_28 = arith.constant 0 : index
    %41 = vector.load %arg4[%c7, %c0_27, %c0_28] : memref<12x4x16xf32, #tpu.memory_space<vmem>>, vector<1x4x16xf32>
    %42 = vector.shape_cast %41 : vector<1x4x16xf32> to vector<4x16xf32>
    %43 = vector.extract_strided_slice %4 {offsets = [0, 18], sizes = [16, 128], strides = [1, 1]} : vector<16x256xf32> to vector<16x128xf32>
    %cst_29 = arith.constant dense<0.000000e+00> : vector<4x128xf32>
    %44 = tpu.matmul %42, %43, %cst_29 {dimension_numbers = #tpu.dot_dimension_numbers<[1], [0], [0], [1], [0, 0, 1, 1], [], []>} : vector<4x16xf32>, vector<16x128xf32>, vector<4x128xf32> -> vector<4x128xf32>
    %45 = arith.addf %40, %44 : vector<4x128xf32>
    %c8 = arith.constant 8 : index
    %c0_30 = arith.constant 0 : index
    %c0_31 = arith.constant 0 : index
    %46 = vector.load %arg4[%c8, %c0_30, %c0_31] : memref<12x4x16xf32, #tpu.memory_space<vmem>>, vector<1x4x16xf32>
    %47 = vector.shape_cast %46 : vector<1x4x16xf32> to vector<4x16xf32>
    %48 = vector.extract_strided_slice %4 {offsets = [0, 30], sizes = [16, 128], strides = [1, 1]} : vector<16x256xf32> to vector<16x128xf32>
    %cst_32 = arith.constant dense<0.000000e+00> : vector<4x128xf32>
    %49 = tpu.matmul %47, %48, %cst_32 {dimension_numbers = #tpu.dot_dimension_numbers<[1], [0], [0], [1], [0, 0, 1, 1], [], []>} : vector<4x16xf32>, vector<16x128xf32>, vector<4x128xf32> -> vector<4x128xf32>
    %50 = arith.addf %45, %49 : vector<4x128xf32>
    %c9 = arith.constant 9 : index
    %c0_33 = arith.constant 0 : index
    %c0_34 = arith.constant 0 : index
    %51 = vector.load %arg4[%c9, %c0_33, %c0_34] : memref<12x4x16xf32, #tpu.memory_space<vmem>>, vector<1x4x16xf32>
    %52 = vector.shape_cast %51 : vector<1x4x16xf32> to vector<4x16xf32>
    %53 = vector.extract_strided_slice %4 {offsets = [0, 0], sizes = [16, 128], strides = [1, 1]} : vector<16x256xf32> to vector<16x128xf32>
    %cst_35 = arith.constant dense<0.000000e+00> : vector<4x128xf32>
    %54 = tpu.matmul %52, %53, %cst_35 {dimension_numbers = #tpu.dot_dimension_numbers<[1], [0], [0], [1], [0, 0, 1, 1], [], []>} : vector<4x16xf32>, vector<16x128xf32>, vector<4x128xf32> -> vector<4x128xf32>
    %55 = arith.addf %50, %54 : vector<4x128xf32>
    %c10 = arith.constant 10 : index
    %c0_36 = arith.constant 0 : index
    %c0_37 = arith.constant 0 : index
    %56 = vector.load %arg4[%c10, %c0_36, %c0_37] : memref<12x4x16xf32, #tpu.memory_space<vmem>>, vector<1x4x16xf32>
    %57 = vector.shape_cast %56 : vector<1x4x16xf32> to vector<4x16xf32>
    %58 = vector.extract_strided_slice %4 {offsets = [0, 18], sizes = [16, 128], strides = [1, 1]} : vector<16x256xf32> to vector<16x128xf32>
    %cst_38 = arith.constant dense<0.000000e+00> : vector<4x128xf32>
    %59 = tpu.matmul %57, %58, %cst_38 {dimension_numbers = #tpu.dot_dimension_numbers<[1], [0], [0], [1], [0, 0, 1, 1], [], []>} : vector<4x16xf32>, vector<16x128xf32>, vector<4x128xf32> -> vector<4x128xf32>
    %60 = arith.addf %55, %59 : vector<4x128xf32>
    %c11 = arith.constant 11 : index
    %c0_39 = arith.constant 0 : index
    %c0_40 = arith.constant 0 : index
    %61 = vector.load %arg4[%c11, %c0_39, %c0_40] : memref<12x4x16xf32, #tpu.memory_space<vmem>>, vector<1x4x16xf32>
    %62 = vector.shape_cast %61 : vector<1x4x16xf32> to vector<4x16xf32>
    %63 = vector.extract_strided_slice %4 {offsets = [0, 36], sizes = [16, 128], strides = [1, 1]} : vector<16x256xf32> to vector<16x128xf32>
    %cst_41 = arith.constant dense<0.000000e+00> : vector<4x128xf32>
    %64 = tpu.matmul %62, %63, %cst_41 {dimension_numbers = #tpu.dot_dimension_numbers<[1], [0], [0], [1], [0, 0, 1, 1], [], []>} : vector<4x16xf32>, vector<16x128xf32>, vector<4x128xf32> -> vector<4x128xf32>
    %65 = arith.addf %60, %64 : vector<4x128xf32>
    %c0_42 = arith.constant 0 : index
    %c0_43 = arith.constant 0 : index
    %66 = vector.load %arg5[%c0_42, %c0_43] : memref<4x1xf32, #tpu.memory_space<vmem>>, vector<4x1xf32>
    %67 = vector.broadcast %66 : vector<4x1xf32> to vector<4x128xf32>
    %68 = arith.addf %65, %67 : vector<4x128xf32>
    %c0_44 = arith.constant 0 : index
    %c0_45 = arith.constant 0 : index
    %c0_46 = arith.constant 0 : index
    %69 = vector.load %arg6[%c0_44, %c0_45, %c0_46] : memref<1x4x128xf32, #tpu.memory_space<vmem>>, vector<1x4x128xf32>
    %70 = vector.shape_cast %69 : vector<1x4x128xf32> to vector<4x128xf32>
    %71 = vector.shape_cast %68 : vector<4x128xf32> to vector<1x4x128xf32>
    tpu.vector_store %arg6[%c0_44, %c0_45, %c0_46], %71 {strides = array<i32>} : memref<1x4x128xf32, #tpu.memory_space<vmem>>, vector<1x4x128xf32>,
    return
  }
  func.func @transform_0(%arg0: i32, %arg1: i32) -> (i32, i32, i32) {
    %c0_i32 = arith.constant 0 : i32
    %c0_i32_0 = arith.constant 0 : i32
    return %arg0, %c0_i32, %arg1 : i32, i32, i32
  }
  func.func @transform_1(%arg0: i32, %arg1: i32) -> (i32, i32, i32) {
    %c1_i32 = arith.constant 1 : i32
    %0 = arith.addi %arg1, %c1_i32 : i32
    %c1_i32_0 = arith.constant 1 : i32
    %1 = arith.muli %0, %c1_i32_0 : i32
    %c0_i32 = arith.constant 0 : i32
    %c0_i32_1 = arith.constant 0 : i32
    return %arg0, %c0_i32, %1 : i32, i32, i32
  }
  func.func @transform_2(%arg0: i32, %arg1: i32) -> (i32, i32, i32) {
    %c0_i32 = arith.constant 0 : i32
    %c0_i32_0 = arith.constant 0 : i32
    %c0_i32_1 = arith.constant 0 : i32
    %c0_i32_2 = arith.constant 0 : i32
    return %c0_i32, %c0_i32_0, %c0_i32_1 : i32, i32, i32
  }
  func.func @transform_3(%arg0: i32, %arg1: i32) -> (i32, i32) {
    %c0_i32 = arith.constant 0 : i32
    %c0_i32_0 = arith.constant 0 : i32
    %c0_i32_1 = arith.constant 0 : i32
    return %c0_i32, %c0_i32_0 : i32, i32
  }
  func.func @transform_4(%arg0: i32, %arg1: i32) -> (i32, i32, i32) {
    %c0_i32 = arith.constant 0 : i32
    %c0_i32_0 = arith.constant 0 : i32
    return %arg0, %c0_i32, %arg1 : i32, i32, i32
  }
}

</mosaic_0001>

<bundles_post_ra>
// kernel: tpu_custom_call.1
= control target key start
LH: loop header
LB: loop body
LE: loop exit
PB: predicated region body
PF: predicated region fallthrough
CT: control target
= control target key end

     0   :  { %s2541_s0 = inlined_call_operand.hbm [shape: f32[2,16,384], index: 0, kind: input, shape index: {}]   ;;  %s2542_s1 = inlined_call_operand.hbm [shape: f32[2,16,384], index: 1, kind: input, shape index: {}]   ;;  %s2543_s2 = inlined_call_operand.hbm [shape: f32[12,4,16], index: 2, kind: input, shape index: {}]   ;;  %s2544_s3 = inlined_call_operand.vmem [shape: f32[4,1], index: 3, kind: input, shape index: {}]   ;;  %s2545_s4 = inlined_call_operand.hbm [shape: f32[2,4,256], index: 4, kind: output, shape index: {}]  }
   0x1   :  { %2566 = sst [smem:[#allocation23_spill]] %s2543_s2 }
   0x2   :  { %2567 = sst [smem:[#allocation24_spill]] %s2544_s3 }
   0x3   :  { %2568 = sst [smem:[#allocation25_spill]] %s2545_s4 }
   0x4   :  { %9 = vsyncpa [#allocation3], 0 }
   0x5   :  { %11 = vsyncpa [#allocation3 + $0x1], 0 }
   0x6   :  { %12 = vsyncpa [#allocation6], 0 }
   0x7   :  { %14 = vsyncpa [#allocation6 + $0x1], 0 }
   0x8   :  { %15 = vsyncpa [#allocation4], 0 }
   0x9   :  { %17 = vsyncpa [#allocation4 + $0x1], 0  ;;  %s2131_s15 = smov 0   ;;  %s2133_s16 = smov 0  }
   0xa   :  { %s2135_s17 = smov 0   ;;  %s2137_s18 = smov 0  }
   0xb   :  { %s2139_s19 = smov 0   ;;  %s2141_s20 = smov 0  }
   0xc   :  { %s2143_s21 = smov 0   ;;  %s2145_s22 = smov 0  }
   0xd   :  { %s2147_s23 = smov 0   ;;  %s2149_s24 = smov 0  }
   0xe   :  { %s2151_s25 = smov 0  }
   0xf LB: > { %2569 = sst [smem:[#allocation13_spill]] %s2047_s16  ;;  %s2185_s26 = sadd.s32 4294967295, %s2083_s25   ;;  %s2083_s25 = sphi %s2151_s25, %s23_s25   ;;  %s2079_s24 = sphi %s2149_s24, %s2624_s24   ;;  %s2075_s23 = sphi %s2147_s23, %s2623_s23   ;;  %s2071_s22 = sphi %s2145_s22, %s2622_s22   ;;  %s2067_s21 = sphi %s2143_s21, %s2621_s21   ;;  %s2063_s20 = sphi %s2141_s20, %s2620_s20   ;;  %s2059_s19 = sphi %s2139_s19, %s2619_s19   ;;  %s2055_s18 = sphi %s2137_s18, %s2618_s18   ;;  %s2051_s17 = sphi %s2135_s17, %s2617_s17   ;;  %s2047_s16 = sphi %s2133_s16, %s2616_s16   ;;  %s2043_s15 = sphi %s2131_s15, %s2615_s15  }
  0x10   : > { %2570 = sst [smem:[#allocation14_spill]] %s2055_s18  ;;  %s1461_s27 = sadd.s32 4294967294, %s2083_s25  }
  0x11   : > { %2571 = sst [smem:[#allocation15_spill]] %s2067_s21  ;;  %p2548_p0 = scmp.eq.s32.totalorder %s2083_s25, 0 }
  0x12   : > { %2572 = sst [smem:[#allocation16_spill]] %s2071_s22  ;;  %p57_p1 = scmp.ne.s32.totalorder %s2059_s19, %s2055_s18 }
  0x13   : > { %2573 = sst [smem:[#allocation17_spill]] %s2185_s26  ;;  %p2546_p2 = scmp.eq.s32.totalorder %s2185_s26, 0 }
  0x14   : > { %p81_p3 = scmp.ne.s32.totalorder %s2051_s17, %s2047_s16  ;;  %p87_p4 = scmp.ne.s32.totalorder %s2047_s16, %s2043_s15 }
  0x15   : > { %p2198_p6 = por %p2546_p2, %p57_p1  ;;  %p161_p9 = scmp.eq.s32.totalorder %s1461_s27, 3 }
  0x16   : > { %p2204_p7 = por %p81_p3, %p2548_p0  ;;  %p2210_p8 = por %p87_p4, %p2546_p2 }
  0x17   : > { %s2574_s28 = scalar_select %p2198_p6, 1, 0 }
  0x18   : > { %s2577_s30 = scalar_select %p2210_p8, 1, 0 }
  0x19   : > { %2575 = sst [smem:[#allocation18_spill]] %s2574_s28  ;;  %p1462_p10 = scmp.ge.s32.totalorder %s2083_s25, 1 }
  0x1a   : > { %2578 = sst [smem:[#allocation19_spill]] %s2577_s30  ;;  %p168_p11 = scmp.lt.s32.totalorder %s2083_s25, 5 }
  0x1b   : > { %p2216_p12 = por %p161_p9, %p57_p1  ;;  %s2085_s7 = smov [#allocation7]  }
  0x1c   : > { %p2220_p13 = pnand %p1462_p10, %p168_p11  ;;  %s180_s8 = sshll.u32 %s2085_s7, 4  ;;  %s181_s8 = int_to_ptr.vmem [resolvable:$true] %s180_s8 }
  0x1d   : > { %s2579_s5 = scalar_select %p2216_p12, 1, 0 }
  0x1e   : > { %s2581_s6 = scalar_select %p2220_p13, 1, 0 }
  0x1f   : > { %2580 = sst [smem:[#allocation20_spill]] %s2579_s5  ;;  %p1658_p3 = pneg %p2220_p13 }
  0x20   : > { %p2547_p1 = scmp.lt.s32.totalorder %s2083_s25, 4  ;;  %s2584_s2 = sld [smem:[#allocation23_spill]] }
  0x21   : > { %p2228_p4 = pnand %p1658_p3, %p2546_p2 }
  0x22   : > { %p2237_p9 = pnand %p2547_p1, %p2204_p7 }
  0x23   : > { %p1866_p11 = pneg %p2228_p4 }
  0x24   : > { %s2583_s10 = scalar_select %p2237_p9, 1, 0 }
  0x26   : > { %s1864_s13 = scalar_lea.hbm %s2584_s2, 768 }
  0x27   : > { %p1865_p10 = scmp.ne.s32.totalorder %s2584_s2, %s1864_s13  ;;  %p1871_p5 = scmp.lt.u32.totalorder %s1864_s13, %s2584_s2 }
  0x29   : > { %p1867_p3 = pnand %p1866_p11, %p1865_p10 }
  0x2b   : > { %p1868_p2 = pneg %p1867_p3 }
  0x2d   : > { %p1873_p7 = pnand %p1871_p5, %p1868_p2 }
  0x2f   : > { %1876 = shalt.err (!%p1873_p7)
}
  0x30   : > { %s1877_s29 = scalar_lea.vmem %s181_s8, 768  ;;  %p1885_p8 = scmp.lt.s32.totalorder %s181_s8, %s181_s8 }
  0x31   : > { %p1878_p1 = scmp.ne.s32.totalorder %s181_s8, %s1877_s29  ;;  %p1886_p6 = scmp.lt.s32.totalorder %s1877_s29, %s1877_s29 }
  0x33   : > { %p1880_p0 = pnand %p1878_p1, %p1866_p11  ;;  %p1887_p13 = por %p1886_p6, %p1885_p8 }
  0x35   : > { %p1881_p12 = pneg %p1880_p0 }
  0x37   : > { %p1888_p9 = pnand %p1887_p13, %p1881_p12 }
  0x39   : > { %1891 = shalt.err (!%p1888_p9)
}
  0x3a   : > { %s2086_s11 = smov 64   ;;  %s2087_s12 = smov 4  }
  0x3b   : > { %1661 = dma.hbm_to_vmem [thread:$0]  (!%p2228_p4), %s2584_s2, 768, %s181_s8, [#allocation6], %s2086_s11, %s2086_s11, %s2087_s12  }
  0x3c   : > { %s32_s15 = sadd.s32 1, %s2075_s23  ;;  %s35_s27 = sadd.s32 1, %s2079_s24 }
  0x3d   : > { %p33_p0 = scmp.ge.s32.totalorder %s32_s15, 2  ;;  %s44_s7 = sadd.s32 1, %s2063_s20 }
  0x3e   : > { %p51_p2 = scmp.ne.s32.totalorder %s2063_s20, %s2059_s19  ;;  %p2586_p5 = scmp.eq.s32.totalorder %s2083_s25, 0 }
  0x3f   : > { %s2262_s29 = scalar_select %p33_p0, 0, %s32_s15  }
  0x40   : > { %s2626_s27 = smov (!%p33_p0, %s35_s27), %s2079_s24  ;;  %p2269_p6 = por %p2586_p5, %p51_p2 }
  0x41   : > { %2585 = sst [smem:[#allocation21_spill]] %s2262_s29  ;;  %s40_s5 = ssub.s32 %s2075_s23, %s2262_s29 }
  0x42   : > { %p37_p8 = scmp.ge.s32.totalorder %s2626_s27, 2  ;;  %s68_s8 = sadd.s32 1, %s2262_s29 }
  0x43   : > { %s70_s11 = ssub.s32 %s32_s15, %s68_s8  ;;  %s74_s12 = sadd.s32 1, %s2051_s17 }
  0x44   : > { %s2628_s27 = smov (%p37_p8, %s2626_s27), 0  ;;  %p2588_p12 = scmp.eq.s32.totalorder %s2185_s26, 3 }
  0x45   : > { %s197_s14 = sand.u32 1, %s2063_s20   ;;  %s39_s2 = ssub.s32 %s2079_s24, %s2628_s27 }
  0x46   : > { %p2279_p13 = por %p2588_p12, %p51_p2  ;;  %s41_s18 = sor.u32 %s40_s5, %s39_s2 }
  0x47   : > { %s71_s4 = sor.u32 %s70_s11, %s39_s2  ;;  %p42_p4 = scmp.eq.s32.totalorder %s41_s18, 0 }
  0x48   : > { %s2589_s13 = scalar_select %p2279_p13, 1, 0 }
  0x49   : > { %p72_p1 = scmp.eq.s32.totalorder %s71_s4, 0  ;;  %s1465_s21 = sshll.u32 %s197_s14, 4 }
  0x4a   : > { %2590 = sst [smem:[#allocation22_spill]] %s2589_s13  ;;  %s1647_s29 = smul.u32 6, %s2079_s24 }
  0x4b   : > { %s2288_s15 = scalar_select %p42_p4, %s2063_s20, %s44_s7  }
  0x4c   : > { %s2291_s8 = scalar_select %p72_p1, %s2051_s17, %s74_s12  }
  0x4d   : > { %s206_s22 = sadd.s32 %s2075_s23, %s1647_s29  ;;  %s201_s30 = scalar_lea.vmem [#allocation2], %s1465_s21 }
  0x4e   : > { %s1466_s3 = sshll.u32 %s206_s22, 7  ;;  %s209_s16 = sshll.u32 %s201_s30, 4  ;;  %s2299_s16 = int_to_ptr.vmem [resolvable:$true] %s209_s16 }
  0x4f   : > { %s2297_s28 = scalar_lea.hbm %s2541_s0, %s1466_s3  ;;  %p2591_p9 = scmp.lt.s32.totalorder %s2083_s25, 4 }
  0x50   : > { %s2312_s21 = scalar_lea.hbm %s2542_s1, %s1466_s3  ;;  %s2314_s22 = scalar_lea.sflag [#allocation3], %s197_s14 }
  0x51   : > { %p2305_p10 = pnand %p2591_p9, %p2269_p6  ;;  %s1892_s26 = scalar_lea.hbm %s2297_s28, 256 }
  0x52   : > { %p1893_p11 = scmp.ne.s32.totalorder %s2297_s28, %s1892_s26  ;;  %s1897_s7 = scalar_lea.hbm %s2541_s0, 1536 }
  0x53   : > { %p1894_p3 = pneg %p2305_p10  ;;  %p1898_p2 = scmp.lt.u32.totalorder %s2297_s28, %s2541_s0 }
  0x54   : > { %p1899_p5 = scmp.lt.u32.totalorder %s1897_s7, %s1892_s26  ;;  %p1901_p8 = scmp.lt.u32.totalorder %s1892_s26, %s2297_s28 }
  0x55   : > { %p1895_p7 = pnand %p1894_p3, %p1893_p11 }
  0x56   : > { %p1900_p6 = por %p1899_p5, %p1898_p2 }
  0x57   : > { %p1896_p0 = pneg %p1895_p7 }
  0x58   : > { %p1902_p12 = por %p1901_p8, %p1900_p6 }
  0x5a   : > { %p1903_p4 = pnand %p1902_p12, %p1896_p0 }
  0x5c   : > { %1906 = shalt.err (!%p1903_p4)
}
  0x5d   : > { %s1907_s3 = scalar_lea.vmem %s2299_s16, 256  ;;  %s2088_s11 = smov [#allocation2]  }
  0x5e   : > { %p1908_p1 = scmp.ne.s32.totalorder %s2299_s16, %s1907_s3  ;;  %s1912_s12 = sshll.u32 %s2088_s11, 4  ;;  %s1913_s12 = int_to_ptr.vmem [resolvable:$false] %s1912_s12 }
  0x5f   : > { %s1914_s13 = scalar_lea.vmem %s1913_s12, 512  ;;  %p1915_p7 = scmp.lt.s32.totalorder %s2299_s16, %s1913_s12 }
  0x60   : > { %p1910_p9 = pnand %p1908_p1, %p1894_p3  ;;  %p1916_p2 = scmp.lt.s32.totalorder %s1914_s13, %s1907_s3 }
  0x62   : > { %p1911_p11 = pneg %p1910_p9  ;;  %p1917_p5 = por %p1916_p2, %p1915_p7 }
  0x64   : > { %p1918_p6 = pnand %p1917_p5, %p1911_p11 }
  0x66   : > { %1921 = shalt.err (!%p1918_p6)
}
  0x67   : > { %s2089_s14 = smov 384   ;;  %s2090_s4 = smov 128  }
  0x68   : > { %s2091_s18 = smov 8   ;;  %s219_s26 = sand.u32 1, %s2083_s25  }
  0x69   : > { %1665 = dma.hbm_to_vmem [thread:$0]  (!%p2305_p10), %s2297_s28, 256, %s2299_s16, %s2314_s22, %s2089_s14, %s2090_s4, %s2091_s18  }
  0x6a   : > { %s221_s30 = sand.u32 1, %s2051_s17   ;;  %s2348_s5 = scalar_lea.hbm %s2312_s21, 128 }
  0x6b   : > { %s1467_s7 = sshll.u32 %s221_s30, 4  ;;  %s2352_s3 = scalar_lea.sflag [#allocation6], %s219_s26 }
  0x6c   : > { %s223_s29 = scalar_lea.vmem [#allocation5], %s1467_s7  ;;  %s1952_s11 = scalar_lea.hbm %s2312_s21, 384 }
  0x6d   : > { %s232_s9 = sshll.u32 %s223_s29, 4  ;;  %p1923_p3 = scmp.ne.s32.totalorder %s2348_s5, %s1952_s11  ;;  %s2350_s9 = int_to_ptr.vmem [resolvable:$true] %s232_s9 }
  0x6e   : > { %p2593_p0 = scmp.ne.s32.totalorder %s2583_s10, 0  ;;  %s1927_s2 = scalar_lea.hbm %s2542_s1, 1536 }
  0x6f   : > { %p1928_p4 = scmp.lt.u32.totalorder %s2348_s5, %s2542_s1  ;;  %p1929_p1 = scmp.lt.u32.totalorder %s1927_s2, %s1952_s11 }
  0x70   : > { %p1924_p8 = pneg %p2593_p0  ;;  %p1931_p11 = scmp.lt.u32.totalorder %s1952_s11, %s2348_s5 }
  0x71   : > { %p1930_p9 = por %p1929_p1, %p1928_p4 }
  0x72   : > { %p1925_p10 = pnand %p1924_p8, %p1923_p3 }
  0x73   : > { %p1932_p7 = por %p1931_p11, %p1930_p9 }
  0x74   : > { %p1926_p12 = pneg %p1925_p10 }
  0x76   : > { %p1933_p2 = pnand %p1932_p7, %p1926_p12 }
  0x78   : > { %1936 = shalt.err (!%p1933_p2)
}
  0x79   : > { %s1937_s21 = scalar_lea.vmem %s2350_s9, 256  ;;  %s2092_s13 = smov [#allocation5]  }
  0x7a   : > { %p1938_p5 = scmp.ne.s32.totalorder %s2350_s9, %s1937_s21  ;;  %s1942_s26 = sshll.u32 %s2092_s13, 4  ;;  %s1943_s26 = int_to_ptr.vmem [resolvable:$false] %s1942_s26 }
  0x7b   : > { %s1944_s30 = scalar_lea.vmem %s1943_s26, 512  ;;  %p1945_p10 = scmp.lt.s32.totalorder %s2350_s9, %s1943_s26 }
  0x7c   : > { %p1940_p6 = pnand %p1938_p5, %p1924_p8  ;;  %p1946_p4 = scmp.lt.s32.totalorder %s1944_s30, %s1937_s21 }
  0x7e   : > { %p1941_p3 = pneg %p1940_p6  ;;  %p1947_p1 = por %p1946_p4, %p1945_p10 }
  0x80   : > { %p1948_p9 = pnand %p1947_p1, %p1941_p3 }
  0x82   : > { %1951 = shalt.err (!%p1948_p9)
}
  0x83   : > { %1668 = dma.hbm_to_vmem [thread:$0]  (!%p2593_p0), %s2348_s5, 256, %s2350_s9, %s2352_s3, %s2089_s14, %s2090_s4, %s2091_s18  }
  0x84   : > { %p2594_p8 = scmp.ne.s32.totalorder %s2581_s6, 0 }
  0x85   : > { %s2595_s7 = sld [smem:[#allocation18_spill]] (!%p2594_p8)  ;;  %s2386_s29 = sand.u32 (!%p2594_p8), 1, %s2059_s19  }
  0x86   : > { %244 = sbr.rel (%p2594_p8) target bundleno = 543 (0x21f), region = 36  ;;  %s1470_s11 = sshll.u32 (!%p2594_p8), %s2386_s29, 4 }
  0x87   : > { %s247_s16 = scalar_lea.sflag (!%p2594_p8), [#allocation3], %s2386_s29  ;;  %s250_s28 = scalar_lea.vmem (!%p2594_p8), [#allocation2], %s1470_s11 }
  0x8b   : > { %p2596_p12 = scmp.ne.s32.totalorder (!%p2594_p8), %s2595_s7, 0 }
  0x8d   : > { %2026 = dma.done.wait (%p2596_p12), %s247_s16, 256  }
  0x8e   : > { %2028 = vsyncadd (%p2596_p12), %s247_s16, 4294967040  ;;  %s2597_s10 = sld [smem:[#allocation17_spill]]  ;;  %s2598_s2 = sld [smem:[#allocation13_spill]] }
  0x8f   : > { %s2599_s14 = sld [smem:[#allocation19_spill]] }
  0x94   : > { %s255_s4 = sand.u32 1, %s2597_s10   ;;  %s257_s6 = sand.u32 1, %s2598_s2  }
  0x95   : > { %s1471_s18 = sshll.u32 %s257_s6, 4  ;;  %s256_s5 = scalar_lea.sflag [#allocation6], %s255_s4 }
  0x96   : > { %s259_s9 = scalar_lea.vmem [#allocation5], %s1471_s18  ;;  %p2600_p0 = scmp.ne.s32.totalorder %s2599_s14, 0 }
  0x98   : > { %2030 = dma.done.wait (%p2600_p0), %s256_s5, 256  }
  0x99   : > { %2032 = vsyncadd (%p2600_p0), %s256_s5, 4294967040  ;;  %p2601_p11 = scmp.eq.s32.totalorder %s2597_s10, 0 }
  0x9b   : > { %2034 = dma.done.wait (%p2601_p11), [#allocation6], 768   ;;  %p2602_p7 = pmov %p2601_p11 }
  0x9c   : > { %v2093_v0 = vmov 0.0|0.0   ;;  %v2406_v1 = vld [vmem:[%s250_s28] sm:$0xff]  ;;  %v2408_v3 = vld [vmem:[%s250_s28 + $0x8] sm:$0xff]  ;;  %s2094_s3 = smov 114   ;;  %s2095_s22 = smov 110   ;;  %vm2096_vm0 = vmmov 0  }
  0x9d   : > { %2036 = vsyncadd (%p2602_p7), [#allocation6], 4294966528  ;;  %1611 = vmatprep.subr.bf16.mxu0 %v2093_v0  ;;  %1614 = vmatprep.subr.bf16.mxu1 %v2093_v0  ;;  %v296_v2 = vld [vmem:[%s259_s9] sm:$0xff]  ;;  %v297_v5 = vld [vmem:[%s259_s9 + $0x8] sm:$0xff]  ;;  %v2097_v7 = vmov 0.0   ;;  %s2098_s12 = smov 106   ;;  %v1639_v8 = vpack.c.bf16 %v2408_v3, %v2406_v1 }
  0x9e   : > { %v1793_v4 = vpack.i.bf16 %v296_v2, %v2406_v1  ;;  %v1798_v6 = vpack.i.bf16 %v297_v5, %v2408_v3  ;;  %1531 = vmatprep.mubr.msk.f32.mxu0 %vm2096_vm0, %v2097_v7  ;;  %1538 = vmatprep.mubr.msk.f32.mxu1 %vm2096_vm0, %v2097_v7  ;;  %s2099_s21 = smov 116   ;;  %s2100_s13 = smov 104   ;;  %v2103_v9 = vmov 0   ;;  %vm313_vm1 = vcmask 900096   ;;  %v300_v35 = vld [vmem:[#allocation7 + $0x4] sm:$0xf] }
  0x9f   : > { %s2101_s26 = smov 122   ;;  %s2102_s30 = smov 98   ;;  %1863 = vset.pattern.permute.xlu0 %v2103_v9  ;;  %vm400_vm2 = vcmask 932864   ;;  %vm488_vm3 = vcmask 867328   ;;  %vm318_vm4 = vcmask 130048   ;;  %vm577_vm5 = vcmask 949248  }
  0xa0   : > { %1794 = vrot.lane.b32.xlu1 %v1793_v4, %s2094_s3  ;;  %1784 = vrot.lane.b32.xlu0 %v1793_v4, %s2095_s22  ;;  %s2104_s7 = smov 92   ;;  %s2603_s28 = sld [smem:[#allocation24_spill]]  ;;  %v298_v36 = vld [vmem:[#allocation7] sm:$0xf]  ;;  %v479_v46 = vld [vmem:[#allocation7 + $0x8] sm:$0xf] }
  0xa1   : > { %vm742_vm6 = vcmask 850944   ;;  %v568_v56 = vld [vmem:[#allocation7 + $0xc] sm:$0xf]  ;;  %v657_v57 = vld [vmem:[#allocation7 + $0x10] sm:$0xf]  ;;  %vm831_vm7 = vcmask 998400  }
  0xa2   : > { %vm996_vm8 = vcmask 801792   ;;  %vm1237_vm9 = vcmask 752640   ;;  %v1228_v1 = vld [vmem:[#allocation7 + $0x2c] sm:$0xf]  ;;  %s2604_s10 = sld [smem:[#allocation16_spill]]  ;;  %s2605_s2 = sld [smem:[#allocation15_spill]] }
  0xa3   : > { %s1473_s14 = sshll.u32 %s2386_s29, 2  ;;  %s2105_s11 = smov [#allocation8]  }
  0xa4   : > { %1799 = vrot.lane.b32.xlu1 %v1798_v6, %s2094_s3  ;;  %1789 = vrot.lane.b32.xlu0 %v1798_v6, %s2095_s22  ;;  %s292_s9 = scalar_lea.vmem [#allocation8], %s1473_s14  ;;  %s1957_s16 = sshll.u32 %s2105_s11, 4  ;;  %s1958_s16 = int_to_ptr.vmem [resolvable:$false] %s1957_s16 }
  0xa5   : > { %s1340_s3 = sshll.u32 %s292_s9, 4  ;;  %s2480_s3 = int_to_ptr.vmem [resolvable:$true] %s1340_s3 }
  0xa6   : > { %v1316_v10 = vld [vmem:[%s2603_s28] sm:$0xf]  ;;  %s1959_s28 = scalar_lea.vmem %s1958_s16, 128  ;;  %p1960_p3 = scmp.lt.s32.totalorder %s2480_s3, %s1958_s16 }
  0xa8   : > { %1809 = vrot.lane.b32.xlu1 %v1798_v6, %s2098_s12  ;;  %1804 = vrot.lane.b32.xlu0 %v1793_v4, %s2098_s12  ;;  %s1487_s4 = sshll.u32 %s2604_s10, 1 }
  0xa9   : > { %s1336_s6 = sadd.s32 %s2605_s2, %s1487_s4 }
  0xaa   : > { %s1488_s5 = sshll.u32 %s1336_s6, 6 }
  0xac   : > { %1819 = vrot.lane.b32.xlu1 %v1798_v6, %s2099_s21  ;;  %1814 = vrot.lane.b32.xlu0 %v1793_v4, %s2099_s21  ;;  %s2607_s21 = sld [smem:[#allocation25_spill]] }
  0xb0   : > { %1829 = vrot.lane.b32.xlu1 %v1798_v6, %s2100_s13  ;;  %1824 = vrot.lane.b32.xlu0 %v1793_v4, %s2100_s13 }
  0xb2   : > { %s2608_s13 = smov %s2607_s21 }
  0xb4   : > { %1839 = vrot.lane.b32.xlu1 %v1798_v6, %s2101_s26  ;;  %1834 = vrot.lane.b32.xlu0 %v1793_v4, %s2101_s26  ;;  %s2478_s26 = scalar_lea.hbm %s2607_s21, %s1488_s5 }
  0xb8   : > { %1849 = vrot.lane.b32.xlu1 %v1798_v6, %s2102_s30  ;;  %1844 = vrot.lane.b32.xlu0 %v1793_v4, %s2102_s30  ;;  %s1325_s30 = scalar_lea.sflag [#allocation4], %s2386_s29 }
  0xbc   : > { %1859 = vrot.lane.b32.xlu1 %v1798_v6, %s2104_s7  ;;  %1854 = vrot.lane.b32.xlu0 %v1793_v4, %s2104_s7  ;;  %v733_v6 = vld [vmem:[#allocation7 + $0x14] sm:$0xf]  ;;  %s1953_s7 = scalar_lea.vmem %s2480_s3, 64 }
  0xbd   : > { %p1954_p2 = scmp.ne.s32.totalorder %s2480_s3, %s1953_s7  ;;  %p1961_p10 = scmp.lt.s32.totalorder %s1959_s28, %s1953_s7 }
  0xbf   : > { %p1955_p5 = pnand %p1954_p2, %p2279_p13  ;;  %p1962_p4 = por %p1961_p10, %p1960_p3 }
  0xc0   : > { %1319 = vperm.xlu0 %1863, %v1316_v10  }
  0xc1   : > { %p1956_p6 = pneg %p1955_p5 }
  0xc3   : > { %p1963_p1 = pnand %p1962_p4, %p1956_p6 }
 0x112   : > { %v1795_v11 = vpop.permute.xlu1 %1794  ;;  %v1785_v12 = vpop.permute.xlu0 %1784 }
 0x113   : > { %v1797_v13 = vunpack.i.h.bf16 %v1795_v11  ;;  %v1796_v14 = vunpack.i.l.bf16 %v1795_v11  ;;  %v1787_v15 = vunpack.i.h.bf16 %v1785_v12  ;;  %v1786_v16 = vunpack.i.l.bf16 %v1785_v12 }
 0x115   : > { %v314_v23 = vsel %vm313_vm1, %v1786_v16, %v1787_v15  ;;  %v401_v25 = vsel %vm400_vm2, %v1796_v14, %v1797_v13 }
 0x116   : > { %v1800_v17 = vpop.permute.xlu1 %1799  ;;  %v1790_v18 = vpop.permute.xlu0 %1789 }
 0x117   : > { %v1802_v19 = vunpack.i.h.bf16 %v1800_v17  ;;  %v1801_v20 = vunpack.i.l.bf16 %v1800_v17  ;;  %v1792_v21 = vunpack.i.h.bf16 %v1790_v18  ;;  %v1791_v22 = vunpack.i.l.bf16 %v1790_v18  ;;  %v822_v18 = vld [vmem:[#allocation7 + $0x18] sm:$0xf] }
 0x119   : > { %v315_v24 = vsel %vm313_vm1, %v1791_v22, %v1792_v21  ;;  %v402_v26 = vsel %vm400_vm2, %v1801_v20, %v1802_v19  ;;  %v911_v19 = vld [vmem:[#allocation7 + $0x1c] sm:$0xf] }
 0x11a   : > { %v2421_v27 = vpack.c.bf16 %v315_v24, %v314_v23  ;;  %v1810_v28 = vpop.permute.xlu1 %1809  ;;  %v1805_v29 = vpop.permute.xlu0 %1804  ;;  %v1615_v30 = vpack.c.bf16 %v402_v26, %v401_v25 }
 0x11b   : > { %v1812_v31 = vunpack.i.h.bf16 %v1810_v28  ;;  %v1811_v32 = vunpack.i.l.bf16 %v1810_v28  ;;  %v1807_v33 = vunpack.i.h.bf16 %v1805_v29  ;;  %v1806_v34 = vunpack.i.l.bf16 %v1805_v29 }
 0x11c   : > { %1613 = vmatpush3.bf16.msra.mxu0 %v2421_v27  ;;  %1616 = vmatpush3.bf16.msra.mxu1 %v1615_v30  ;;  %v987_v30 = vld [vmem:[#allocation7 + $0x20] sm:$0xf] }
 0x11d   : > { %v490_v37 = vsel %vm488_vm3, %v1811_v32, %v1812_v31  ;;  %v489_v38 = vsel %vm488_vm3, %v1806_v34, %v1807_v33  ;;  %1617 = vmatprep.subr.bf16.mxu0 %v2093_v0  ;;  %1620 = vmatprep.subr.bf16.mxu1 %v2093_v0  ;;  %v1076_v33 = vld [vmem:[#allocation7 + $0x24] sm:$0xf] }
 0x11e   : > { %v1618_v39 = vpack.c.bf16 %v490_v37, %v489_v38  ;;  %v1820_v40 = vpop.permute.xlu1 %1819  ;;  %v1815_v41 = vpop.permute.xlu0 %1814 }
 0x11f   : > { %v1822_v42 = vunpack.i.h.bf16 %v1820_v40  ;;  %v1821_v43 = vunpack.i.l.bf16 %v1820_v40  ;;  %v1817_v44 = vunpack.i.h.bf16 %v1815_v41  ;;  %v1816_v45 = vunpack.i.l.bf16 %v1815_v41  ;;  %1532 = vmatmul.mubr.msk.f32.vlgmr.msra.gmra.mrb[0].mxu0 %vm318_vm4, %v300_v35  ;;  %1539 = vmatmul.mubr.msk.f32.vlgmr.msra.gmra.mrb[0].mxu1 %vm318_vm4, %v298_v36  ;;  %v1152_v35 = vld [vmem:[#allocation7 + $0x28] sm:$0xf] }
 0x120   : > { %1619 = vmatpush3.bf16.msra.mxu0 %v1618_v39  ;;  %1545 = vmatprep.mubr.msk.f32.mxu0 %vm2096_vm0, %v2097_v7 }
 0x121   : > { %v579_v47 = vsel %vm577_vm5, %v1821_v43, %v1822_v42  ;;  %v578_v48 = vsel %vm577_vm5, %v1816_v45, %v1817_v44  ;;  %1623 = vmatprep.subr.bf16.mxu0 %v2093_v0  ;;  %1552 = vmatprep.mubr.msk.f32.mxu1 %vm2096_vm0, %v2097_v7 }
 0x122   : > { %v1621_v49 = vpack.c.bf16 %v579_v47, %v578_v48  ;;  %v1830_v50 = vpop.permute.xlu1 %1829  ;;  %v1825_v51 = vpop.permute.xlu0 %1824 }
 0x123   : > { %v1832_v52 = vunpack.i.h.bf16 %v1830_v50  ;;  %v1831_v53 = vunpack.i.l.bf16 %v1830_v50  ;;  %v1827_v54 = vunpack.i.h.bf16 %v1825_v51  ;;  %v1826_v55 = vunpack.i.l.bf16 %v1825_v51  ;;  %1546 = vmatmul.mubr.msk.f32.vlgmr.msra.gmra.mrb[2].mxu0 %vm318_vm4, %v479_v46 }
 0x124   : > { %1622 = vmatpush3.bf16.msra.mxu1 %v1621_v49  ;;  %1625 = vmatpush3.bf16.msra.mxu0 %v2421_v27 }
 0x125   : > { %v744_v58 = vsel %vm742_vm6, %v1831_v53, %v1832_v52  ;;  %v743_v59 = vsel %vm742_vm6, %v1826_v55, %v1827_v54  ;;  %1626 = vmatprep.subr.bf16.mxu1 %v2093_v0  ;;  %1559 = vmatprep.mubr.msk.f32.mxu0 %vm2096_vm0, %v2097_v7 }
 0x126   : > { %v1627_v60 = vpack.c.bf16 %v744_v58, %v743_v59  ;;  %v1840_v61 = vpop.permute.xlu1 %1839  ;;  %v1835_v62 = vpop.permute.xlu0 %1834  ;;  %1629 = vmatprep.subr.bf16.mxu0 %v2093_v0 }
 0x127   : > { %v1842_v63 = vunpack.i.h.bf16 %v1840_v61  ;;  %v1841_v2 = vunpack.i.l.bf16 %v1840_v61  ;;  %v1837_v4 = vunpack.i.h.bf16 %v1835_v62  ;;  %v1836_v5 = vunpack.i.l.bf16 %v1835_v62  ;;  %1553 = vmatmul.mubr.msk.f32.vlgmr.msra.gmra.mrb[2].mxu1 %vm318_vm4, %v568_v56  ;;  %1560 = vmatmul.mubr.msk.f32.vlgmr.msra.gmra.mrb[4].mxu0 %vm318_vm4, %v657_v57 }
 0x128   : > { %1628 = vmatpush3.bf16.msra.mxu1 %v1627_v60  ;;  %1566 = vmatprep.mubr.msk.f32.mxu1 %vm2096_vm0, %v2097_v7 }
 0x129   : > { %v833_v9 = vsel %vm831_vm7, %v1841_v2, %v1842_v63  ;;  %v832_v10 = vsel %vm831_vm7, %v1836_v5, %v1837_v4  ;;  %1632 = vmatprep.subr.bf16.mxu1 %v2093_v0  ;;  %1573 = vmatprep.mubr.msk.f32.mxu0 %vm2096_vm0, %v2097_v7 }
 0x12a   : > { %v1630_v11 = vpack.c.bf16 %v833_v9, %v832_v10  ;;  %v1850_v12 = vpop.permute.xlu1 %1849  ;;  %v1845_v13 = vpop.permute.xlu0 %1844 }
 0x12b   : > { %v1852_v14 = vunpack.i.h.bf16 %v1850_v12  ;;  %v1851_v15 = vunpack.i.l.bf16 %v1850_v12  ;;  %v1847_v16 = vunpack.i.h.bf16 %v1845_v13  ;;  %v1846_v17 = vunpack.i.l.bf16 %v1845_v13  ;;  %1567 = vmatmul.mubr.msk.f32.vlgmr.msra.gmra.mrb[4].mxu1 %vm318_vm4, %v733_v6 }
 0x12c   : > { %1631 = vmatpush3.bf16.msra.mxu0 %v1630_v11  ;;  %1634 = vmatpush3.bf16.msra.mxu1 %v2421_v27 }
 0x12d   : > { %v998_v20 = vsel %vm996_vm8, %v1851_v15, %v1852_v14  ;;  %v997_v21 = vsel %vm996_vm8, %v1846_v17, %v1847_v16  ;;  %1635 = vmatprep.subr.bf16.mxu0 %v2093_v0  ;;  %1580 = vmatprep.mubr.msk.f32.mxu1 %vm2096_vm0, %v2097_v7 }
 0x12e   : > { %v1636_v22 = vpack.c.bf16 %v998_v20, %v997_v21  ;;  %v1860_v23 = vpop.permute.xlu1 %1859  ;;  %v1855_v24 = vpop.permute.xlu0 %1854  ;;  %1638 = vmatprep.subr.bf16.mxu1 %v2093_v0 }
 0x12f   : > { %1574 = vmatmul.mubr.msk.f32.vlgmr.msra.gmra.mrb[6].mxu0 %vm318_vm4, %v822_v18  ;;  %v1862_v25 = vunpack.i.h.bf16 %v1860_v23  ;;  %v1861_v26 = vunpack.i.l.bf16 %v1860_v23  ;;  %v1857_v28 = vunpack.i.h.bf16 %v1855_v24  ;;  %v1856_v29 = vunpack.i.l.bf16 %v1855_v24  ;;  %1581 = vmatmul.mubr.msk.f32.vlgmr.msra.gmra.mrb[6].mxu1 %vm318_vm4, %v911_v19 }
 0x130   : > { %1637 = vmatpush3.bf16.msra.mxu0 %v1636_v22  ;;  %1587 = vmatprep.mubr.msk.f32.mxu0 %vm2096_vm0, %v2097_v7 }
 0x131   : > { %v1239_v31 = vsel %vm1237_vm9, %v1861_v26, %v1862_v25  ;;  %v1238_v32 = vsel %vm1237_vm9, %v1856_v29, %v1857_v28  ;;  %1640 = vmatpush3.bf16.msra.mxu1 %v1639_v8  ;;  %1641 = vmatprep.subr.bf16.mxu0 %v2093_v0 }
 0x132   : > { %v1645_v34 = vpack.c.bf16 %v1239_v31, %v1238_v32  ;;  %1594 = vmatprep.mubr.msk.f32.mxu1 %vm2096_vm0, %v2097_v7  ;;  %1644 = vmatprep.subr.bf16.mxu1 %v2093_v0 }
 0x133   : > { %1588 = vmatmul.mubr.msk.f32.vlgmr.msra.gmra.mrb[8].mxu0 %vm318_vm4, %v987_v30 }
 0x134   : > { %1643 = vmatpush3.bf16.msra.mxu0 %v2421_v27  ;;  %1595 = vmatmul.mubr.msk.f32.vlgmr.msra.gmra.mrb[8].mxu1 %vm318_vm4, %v1076_v33 }
 0x135   : > { %1601 = vmatprep.mubr.msk.f32.mxu0 %vm2096_vm0, %v2097_v7  ;;  %1646 = vmatpush3.bf16.msra.mxu1 %v1645_v34 }
 0x136   : > { %1608 = vmatprep.mubr.msk.f32.mxu1 %vm2096_vm0, %v2097_v7 }
 0x137   : > { %1602 = vmatmul.mubr.msk.f32.vlgmr.msra.gmra.mrb[10].mxu0 %vm318_vm4, %v1152_v35 }
 0x138   : > { %1609 = vmatmul.mubr.msk.f32.vlgmr.msra.gmra.mrb[10].mxu1 %vm318_vm4, %v1228_v1 }
 0x13f   : > { %v1320_v4 = vpop.permute.xlu0 %1319 }
 0x1f2   : > { %v388_v0 = vpop.f32.mrb[0].mxu0  ;;  %v474_v3 = vpop.f32.mrb[0].mxu1 }
 0x1f3   : > { %v1533_v8 = vpop.f32.mrb[1].mxu0  ;;  %v475_v36 = vadd.f32 %v474_v3, %v388_v0  ;;  %v1540_v27 = vpop.f32.mrb[1].mxu1 }
 0x1f6   : > { %v562_v37 = vpop.f32.mrb[2].mxu0 }
 0x1f7   : > { %v566_v38 = vadd.f32 %v562_v37, %v475_v36  ;;  %v1547_v39 = vpop.f32.mrb[3].mxu0 }
 0x1fa   : > { %v651_v40 = vpop.f32.mrb[2].mxu1  ;;  %v727_v41 = vpop.f32.mrb[4].mxu0 }
 0x1fb   : > { %v655_v42 = vadd.f32 %v651_v40, %v566_v38  ;;  %v1554_v43 = vpop.f32.mrb[3].mxu1  ;;  %v1561_v44 = vpop.f32.mrb[5].mxu0 }
 0x1fd   : > { %v731_v7 = vadd.f32 %v727_v41, %v655_v42 }
 0x1fe   : > { %v816_v45 = vpop.f32.mrb[4].mxu1 }
 0x1ff   : > { %v820_v46 = vadd.f32 %v816_v45, %v731_v7  ;;  %v1568_v47 = vpop.f32.mrb[5].mxu1 }
 0x202   : > { %v905_v48 = vpop.f32.mrb[6].mxu0  ;;  %v981_v49 = vpop.f32.mrb[6].mxu1 }
 0x203   : > { %v909_v50 = vadd.f32 %v905_v48, %v820_v46  ;;  %v1575_v51 = vpop.f32.mrb[7].mxu0  ;;  %v1582_v52 = vpop.f32.mrb[7].mxu1 }
 0x205   : > { %v985_v53 = vadd.f32 %v981_v49, %v909_v50 }
 0x206   : > { %v1070_v54 = vpop.f32.mrb[8].mxu0 }
 0x207   : > { %v1074_v55 = vadd.f32 %v1070_v54, %v985_v53  ;;  %v1589_v56 = vpop.f32.mrb[9].mxu0  ;;  %v1146_v57 = vpop.f32.mrb[8].mxu1 }
 0x208   : > { %v1596_v58 = vpop.f32.mrb[9].mxu1 }
 0x209   : > { %v1150_v59 = vadd.f32 %v1146_v57, %v1074_v55 }
 0x20a   : > { %v1222_v60 = vpop.f32.mrb[10].mxu0 }
 0x20b   : > { %v1226_v61 = vadd.f32 %v1222_v60, %v1150_v59  ;;  %v1603_v62 = vpop.f32.mrb[11].mxu0  ;;  %v1311_v63 = vpop.f32.mrb[10].mxu1 }
 0x20c   : > { %v1610_v2 = vpop.f32.mrb[11].mxu1 }
 0x20d   : > { %v1315_v5 = vadd.f32 %v1311_v63, %v1226_v61 }
 0x20f   : > { %v1322_v6 = vadd.f32 %v1320_v4, %v1315_v5 }
 0x211   : > { %1323 = vst [vmem:[%s292_s9] sm:$0xf] %v1322_v6 }
 0x212   : > { %1966 = shalt.err (!%p1963_p1)
}
 0x213   : > { %s1967_s29 = scalar_lea.hbm %s2478_s26, 64  ;;  %s1971_s14 = scalar_lea.hbm %s2608_s13, 256 }
 0x214   : > { %p1968_p9 = scmp.ne.s32.totalorder %s2478_s26, %s1967_s29  ;;  %p1972_p0 = scmp.lt.u32.totalorder %s2478_s26, %s2608_s13 }
 0x215   : > { %p1973_p11 = scmp.lt.u32.totalorder %s1971_s14, %s1967_s29  ;;  %p1975_p2 = scmp.lt.u32.totalorder %s1967_s29, %s2478_s26 }
 0x216   : > { %p1969_p8 = pnand %p1968_p9, %p2279_p13 }
 0x217   : > { %p1974_p7 = por %p1973_p11, %p1972_p0 }
 0x218   : > { %p1970_p12 = pneg %p1969_p8 }
 0x219   : > { %p1976_p5 = por %p1975_p2, %p1974_p7 }
 0x21b   : > { %p1977_p6 = pnand %p1976_p5, %p1970_p12 }
 0x21d   : > { %1980 = shalt.err (!%p1977_p6)
}
 0x21e   : > { %1656 = dma.vmem_to_hbm [thread:$0]  (%p2279_p13), %s2480_s3, 64, %s2478_s26, %s1325_s30  }
 0x21f PF: > { %s2609_s5 = sld [smem:[#allocation14_spill]]  ;;  %s2610_s9 = sld [smem:[#allocation20_spill]] }
 0x220   : > { %p1676_p3 = scmp.ge.s32.totalorder %s2083_s25, 2 }
 0x225   : > { %s1352_s22 = sand.u32 1, %s2609_s5   ;;  %p2611_p10 = scmp.ne.s32.totalorder %s2610_s9, 0 }
 0x226   : > { %s1353_s12 = scalar_lea.sflag [#allocation4], %s1352_s22 }
 0x227   : > { %p1670_p4 = pnand %p1676_p3, %p2611_p10 }
 0x229   : > { %2038 = dma.done.wait (!%p1670_p4), %s1353_s12, 64  }
 0x22a   : > { %2040 = vsyncadd (!%p1670_p4), %s1353_s12, 4294967232  ;;  %s23_s25 = sadd.s32 1, %s2083_s25   ;;  %s2612_s21 = sld [smem:[#allocation13_spill]] }
 0x22b   : > { %p20_p1 = scmp.ge.s32.totalorder %s23_s25, 6   ;;  %s2613_s3 = smov %s2288_s15 }
 0x22c   : > { %s2614_s26 = sld [smem:[#allocation21_spill]]  ;;  %s2616_s16 = smov %s2051_s17 }
 0x22d   : > { %s2617_s17 = smov %s2291_s8  ;;  %s2618_s18 = smov %s2059_s19 }
 0x22e   : > { %s2619_s19 = smov %s2063_s20  ;;  %s2620_s20 = smov %s2613_s3 }
 0x22f   : > { %s2622_s22 = smov %s2079_s24  ;;  %s2624_s24 = smov %s2628_s27 }
 0x230   : > { %s2615_s15 = smov %s2612_s21  ;;  %s2621_s21 = smov %s2075_s23 }
 0x231   :  { %22 = sbr.rel (!%p20_p1) target bundleno = 15 (0xf), region = 109 }
 0x232   : > { %s2623_s23 = smov %s2614_s26 }
 0x238   :  { %1358 = vsyncpa [#allocation3], 1 }
 0x239   :  { %1360 = vsyncpa [#allocation3 + $0x1], 1 }
 0x23a   :  { %1361 = vsyncpa [#allocation6], 1 }
 0x23b   :  { %1363 = vsyncpa [#allocation6 + $0x1], 1 }
 0x23c   :  { %1364 = vsyncpa [#allocation4], 1 }
 0x23d   :  { %1366 = vsyncpa [#allocation4 + $0x1], 1 }

</bundles_post_ra>
